<compile_context>
chip_gen: v5e
topology: v5e:2x2
jax: 0.10.0
libtpu: 0.0.40
codegen_flags: <defaults>
</compile_context>

<pallas_src>
import functools

import jax
import jax.numpy as jnp
from jax.experimental import pallas as pl
from jax.experimental.pallas import tpu as pltpu


def _round_up(x, m):
    return ((x + m - 1) // m) * m


def _transformador_kernel(x_ref, w1_ref, b1_ref, w2_ref, b2_ref, z_ref, h_ref):
    # x tile: (TB, Kp); weights resident: (Kp, Hp) / (Hp, Kp); biases (1, N).
    x = x_ref[...]                                       # native dtype into MXU

    # layer1: h = x @ W1 + b1  (f32 accumulation on the MXU)
    h = jnp.dot(x, w1_ref[...], preferred_element_type=jnp.float32)
    h = h + b1_ref[...].astype(jnp.float32)              # (1, Hp) broadcasts

    # ReLU epilogue in f32 (VPU), then feed layer2 in the operand dtype.
    y = jnp.maximum(h, 0.0)

    # layer2: z = y @ W2 + b2
    z = jnp.dot(y.astype(w2_ref.dtype), w2_ref[...],
                preferred_element_type=jnp.float32)
    z = z + b2_ref[...].astype(jnp.float32)

    h_ref[...] = h.astype(h_ref.dtype)
    z_ref[...] = z.astype(z_ref.dtype)


@functools.partial(jax.jit, static_argnames=("block_batch",))
def transformador_forward(x, w1, b1, w2, b2, *, block_batch=None):
    """x: [B, n_inputs]; w1: [n_inputs, n_hidden]; b1: [n_hidden];
       w2: [n_hidden, n_inputs]; b2: [n_inputs]. Returns (z, h)."""
    B, n_inputs = x.shape
    n_hidden = w1.shape[1]
    dtype = x.dtype
    itemsize = jnp.dtype(dtype).itemsize

    # Lane-dense (multiple-of-128) feature dims inside the kernel.
    Kp = _round_up(n_inputs, 128)
    Hp = _round_up(n_hidden, 128)

    # Batch tile: multiple of 8 sublanes, capped so the per-step working set
    # (double-buffered x/z/h tiles + resident weights) stays well under the
    # smallest (v7x) scoped-VMEM budget.
    if block_batch is None:
        budget = 8 * 1024 * 1024                   # ~8 MiB for streamed tiles
        per_row = 2 * (2 * Kp + Hp) * itemsize     # 2x-buffered x, z, h rows
        tb = max(8, min(512, budget // max(per_row, 1)))
        block_batch = min(_round_up(B, 8), _round_up(tb, 8))
    TB = block_batch
    Bp = _round_up(B, TB)

    # Wrapper-side zero padding (layout plumbing only, exact w.r.t. the math).
    # Skipped entirely when shapes are already aligned -> no extra HBM copies.
    x_p = x if (Bp == B and Kp == n_inputs) else jnp.pad(
        x, ((0, Bp - B), (0, Kp - n_inputs)))
    w1_p = w1 if (Kp == n_inputs and Hp == n_hidden) else jnp.pad(
        w1, ((0, Kp - n_inputs), (0, Hp - n_hidden)))
    w2_p = w2 if (Hp == n_hidden and Kp == n_inputs) else jnp.pad(
        w2, ((0, Hp - n_hidden), (0, Kp - n_inputs)))
    b1_p = (b1 if Hp == n_hidden else jnp.pad(b1, (0, Hp - n_hidden))).reshape(1, Hp)
    b2_p = (b2 if Kp == n_inputs else jnp.pad(b2, (0, Kp - n_inputs))).reshape(1, Kp)

    grid = (Bp // TB,)

    out_shapes = (
        jax.ShapeDtypeStruct((Bp, Kp), dtype),   # z (padded)
        jax.ShapeDtypeStruct((Bp, Hp), dtype),   # h (padded)
    )

    cost = pl.CostEstimate(
        flops=2 * Bp * Kp * Hp + 2 * Bp * Hp * Kp,
        transcendentals=0,
        bytes_accessed=(Bp * Kp + Kp * Hp + Hp + Hp * Kp + Kp   # inputs
                        + Bp * Kp + Bp * Hp) * itemsize,        # outputs
    )

    z_p, h_p = pl.pallas_call(
        _transformador_kernel,
        out_shape=out_shapes,
        grid=grid,
        in_specs=[
            pl.BlockSpec((TB, Kp), lambda i: (i, 0)),   # x tile streams
            pl.BlockSpec((Kp, Hp), lambda i: (0, 0)),   # W1 resident
            pl.BlockSpec((1, Hp), lambda i: (0, 0)),    # b1 resident
            pl.BlockSpec((Hp, Kp), lambda i: (0, 0)),   # W2 resident
            pl.BlockSpec((1, Kp), lambda i: (0, 0)),    # b2 resident
        ],
        out_specs=(
            pl.BlockSpec((TB, Kp), lambda i: (i, 0)),   # z tile
            pl.BlockSpec((TB, Hp), lambda i: (i, 0)),   # h tile
        ),
        compiler_params=pltpu.CompilerParams(
            dimension_semantics=("parallel",),          # megacore / v7x 2-TC
        ),
        cost_estimate=cost,
    )(x_p, w1_p, b1_p, w2_p, b2_p)

    # Slice back to logical shapes (no-op views when nothing was padded).
    z = z_p if (Bp == B and Kp == n_inputs) else z_p[:B, :n_inputs]
    h = h_p if (Bp == B and Hp == n_hidden) else h_p[:B, :n_hidden]
    # TODO(synk): if the caller only needs h as a backward residual, drop the
    # h output (or store it in bf16) to roughly halve HBM write traffic.
    return z, h


def init_params(key, n_inputs, n_hidden, dtype=jnp.float32):
    """Deterministic init mimicking torch.nn.Linear (uniform +- 1/sqrt(fan_in))."""
    k1, k2, k3, k4 = jax.random.split(key, 4)
    bound1 = 1.0 / (n_inputs ** 0.5)
    bound2 = 1.0 / (n_hidden ** 0.5)
    # Stored as [in_features, out_features] (transposed vs torch weight layout).
    w1 = jax.random.uniform(k1, (n_inputs, n_hidden), dtype, -bound1, bound1)
    b1 = jax.random.uniform(k2, (n_hidden,), dtype, -bound1, bound1)
    w2 = jax.random.uniform(k3, (n_hidden, n_inputs), dtype, -bound2, bound2)
    b2 = jax.random.uniform(k4, (n_inputs,), dtype, -bound2, bound2)
    return w1, b1, w2, b2


if __name__ == "__main__":
    key = jax.random.PRNGKey(0)
    kx, kp = jax.random.split(key)

    batch, n_inputs, n_hidden = 8, 16, 32
    x = jax.random.normal(kx, (batch, n_inputs), jnp.float32)
    w1, b1, w2, b2 = init_params(kp, n_inputs, n_hidden)

    z, h = transformador_forward(x, w1, b1, w2, b2)
    jax.block_until_ready((z, h))

    # Reference check in plain JAX.
    h_ref = x @ w1 + b1
    z_ref = jnp.maximum(h_ref, 0.0) @ w2 + b2
    assert z.shape == (batch, n_inputs) and h.shape == (batch, n_hidden)
    assert jnp.allclose(h, h_ref, atol=1e-5, rtol=1e-5)
    assert jnp.allclose(z, z_ref, atol=1e-5, rtol=1e-5)

    print("KERNEL_OK")
</pallas_src>

<mosaic_0001>
module attributes {stable_mosaic.version = 11 : i64} {
  func.func @_transformador_kernel(%arg0: i32, %arg1: memref<8x128xf32, #tpu.memory_space<vmem>>, %arg2: memref<128x128xf32, #tpu.memory_space<vmem>>, %arg3: memref<1x128xf32, #tpu.memory_space<vmem>>, %arg4: memref<128x128xf32, #tpu.memory_space<vmem>>, %arg5: memref<1x128xf32, #tpu.memory_space<vmem>>, %arg6: memref<8x128xf32, #tpu.memory_space<vmem>>, %arg7: memref<8x128xf32, #tpu.memory_space<vmem>>) attributes {dimension_semantics = [#tpu.dimension_semantics<parallel>], iteration_bounds = array<i64: 1>, scalar_prefetch = 0 : i64, scratch_operands = 0 : i64, tpu.core_type = #tpu.core_type<tc>, window_params = [{transform_indices = @transform_0, window_bounds = array<i64: 8, 128>}, {pipeline_mode = #tpu.pipeline_mode<synchronous>, transform_indices = @transform_1, window_bounds = array<i64: 128, 128>}, {pipeline_mode = #tpu.pipeline_mode<synchronous>, transform_indices = @transform_2, window_bounds = array<i64: 1, 128>}, {pipeline_mode = #tpu.pipeline_mode<synchronous>, transform_indices = @transform_3, window_bounds = array<i64: 128, 128>}, {pipeline_mode = #tpu.pipeline_mode<synchronous>, transform_indices = @transform_4, window_bounds = array<i64: 1, 128>}, {transform_indices = @transform_5, window_bounds = array<i64: 8, 128>}, {transform_indices = @transform_6, window_bounds = array<i64: 8, 128>}]} {
    %c0 = arith.constant 0 : index
    %c0_0 = arith.constant 0 : index
    %0 = vector.load %arg1[%c0, %c0_0] : memref<8x128xf32, #tpu.memory_space<vmem>>, vector<8x128xf32>
    %c0_1 = arith.constant 0 : index
    %c0_2 = arith.constant 0 : index
    %1 = vector.load %arg2[%c0_1, %c0_2] : memref<128x128xf32, #tpu.memory_space<vmem>>, vector<128x128xf32>
    %cst = arith.constant dense<0.000000e+00> : vector<8x128xf32>
    %2 = tpu.matmul %0, %1, %cst {dimension_numbers = #tpu.dot_dimension_numbers<[1], [0], [0], [1], [0, 0, 1, 1], [], []>} : vector<8x128xf32>, vector<128x128xf32>, vector<8x128xf32> -> vector<8x128xf32>
    %c0_3 = arith.constant 0 : index
    %c0_4 = arith.constant 0 : index
    %3 = vector.load %arg3[%c0_3, %c0_4] : memref<1x128xf32, #tpu.memory_space<vmem>>, vector<1x128xf32>
    %4 = vector.broadcast %3 : vector<1x128xf32> to vector<8x128xf32>
    %5 = arith.addf %2, %4 : vector<8x128xf32>
    %cst_5 = arith.constant 0.000000e+00 : f32
    %6 = vector.broadcast %cst_5 : f32 to vector<8x128xf32>
    %7 = arith.maximumf %5, %6 : vector<8x128xf32>
    %c0_6 = arith.constant 0 : index
    %c0_7 = arith.constant 0 : index
    %8 = vector.load %arg4[%c0_6, %c0_7] : memref<128x128xf32, #tpu.memory_space<vmem>>, vector<128x128xf32>
    %cst_8 = arith.constant dense<0.000000e+00> : vector<8x128xf32>
    %9 = tpu.matmul %7, %8, %cst_8 {dimension_numbers = #tpu.dot_dimension_numbers<[1], [0], [0], [1], [0, 0, 1, 1], [], []>} : vector<8x128xf32>, vector<128x128xf32>, vector<8x128xf32> -> vector<8x128xf32>
    %c0_9 = arith.constant 0 : index
    %c0_10 = arith.constant 0 : index
    %10 = vector.load %arg5[%c0_9, %c0_10] : memref<1x128xf32, #tpu.memory_space<vmem>>, vector<1x128xf32>
    %11 = vector.broadcast %10 : vector<1x128xf32> to vector<8x128xf32>
    %12 = arith.addf %9, %11 : vector<8x128xf32>
    %c0_11 = arith.constant 0 : index
    %c0_12 = arith.constant 0 : index
    %13 = vector.load %arg7[%c0_11, %c0_12] : memref<8x128xf32, #tpu.memory_space<vmem>>, vector<8x128xf32>
    tpu.vector_store %arg7[%c0_11, %c0_12], %5 {strides = array<i32>} : memref<8x128xf32, #tpu.memory_space<vmem>>, vector<8x128xf32>,
    %c0_13 = arith.constant 0 : index
    %c0_14 = arith.constant 0 : index
    %14 = vector.load %arg6[%c0_13, %c0_14] : memref<8x128xf32, #tpu.memory_space<vmem>>, vector<8x128xf32>
    tpu.vector_store %arg6[%c0_13, %c0_14], %12 {strides = array<i32>} : memref<8x128xf32, #tpu.memory_space<vmem>>, vector<8x128xf32>,
    return
  }
  func.func @transform_0(%arg0: i32) -> (i32, i32) {
    %c0_i32 = arith.constant 0 : i32
    %c0_i32_0 = arith.constant 0 : i32
    return %arg0, %c0_i32 : i32, i32
  }
  func.func @transform_1(%arg0: i32) -> (i32, i32) {
    %c0_i32 = arith.constant 0 : i32
    %c0_i32_0 = arith.constant 0 : i32
    %c0_i32_1 = arith.constant 0 : i32
    return %c0_i32, %c0_i32_0 : i32, i32
  }
  func.func @transform_2(%arg0: i32) -> (i32, i32) {
    %c0_i32 = arith.constant 0 : i32
    %c0_i32_0 = arith.constant 0 : i32
    %c0_i32_1 = arith.constant 0 : i32
    return %c0_i32, %c0_i32_0 : i32, i32
  }
  func.func @transform_3(%arg0: i32) -> (i32, i32) {
    %c0_i32 = arith.constant 0 : i32
    %c0_i32_0 = arith.constant 0 : i32
    %c0_i32_1 = arith.constant 0 : i32
    return %c0_i32, %c0_i32_0 : i32, i32
  }
  func.func @transform_4(%arg0: i32) -> (i32, i32) {
    %c0_i32 = arith.constant 0 : i32
    %c0_i32_0 = arith.constant 0 : i32
    %c0_i32_1 = arith.constant 0 : i32
    return %c0_i32, %c0_i32_0 : i32, i32
  }
  func.func @transform_5(%arg0: i32) -> (i32, i32) {
    %c0_i32 = arith.constant 0 : i32
    %c0_i32_0 = arith.constant 0 : i32
    return %arg0, %c0_i32 : i32, i32
  }
  func.func @transform_6(%arg0: i32) -> (i32, i32) {
    %c0_i32 = arith.constant 0 : i32
    %c0_i32_0 = arith.constant 0 : i32
    return %arg0, %c0_i32 : i32, i32
  }
}

</mosaic_0001>

<bundles_post_ra>
// kernel: transformador_forward.1
= control target key start
LH: loop header
LB: loop body
LE: loop exit
PB: predicated region body
PF: predicated region fallthrough
CT: control target
= control target key end

     0   :  { %12 = vsyncpa [#allocation3], 0  ;;  %s344_s0 = inlined_call_operand.vmem [shape: f32[8,128], index: 0, kind: input, shape index: {}]   ;;  %s345_s1 = inlined_call_operand.vmem [shape: f32[128,128], index: 1, kind: input, shape index: {}]   ;;  %s346_s2 = inlined_call_operand.vmem [shape: f32[1,128], index: 2, kind: input, shape index: {}]   ;;  %s347_s3 = inlined_call_operand.vmem [shape: f32[128,128], index: 3, kind: input, shape index: {}]   ;;  %s348_s4 = inlined_call_operand.vmem [shape: f32[1,128], index: 4, kind: input, shape index: {}]   ;;  %s349_s5 = inlined_call_operand.hbm [shape: f32[8,128], index: 5, kind: output, shape index: {0}]   ;;  %s350_s6 = inlined_call_operand.hbm [shape: f32[8,128], index: 6, kind: output, shape index: {1}]  }
   0x1   :  { %v40_v0 = vld [vmem:[%s345_s1 + $0x78] sm:$0xff]  ;;  %v39_v1 = vld [vmem:[%s345_s1 + $0x70] sm:$0xff]  ;;  %v38_v2 = vld [vmem:[%s345_s1 + $0x68] sm:$0xff] }
   0x2   :  { %45 = vmatpush.msra.mxu0 %v40_v0  ;;  %v37_v3 = vld [vmem:[%s345_s1 + $0x60] sm:$0xff]  ;;  %v81_v4 = vld [vmem:[%s347_s3 + $0x78] sm:$0xff]  ;;  %v80_v6 = vld [vmem:[%s347_s3 + $0x70] sm:$0xff] }
   0x3   :  { %v36_v5 = vld [vmem:[%s345_s1 + $0x58] sm:$0xff]  ;;  %86 = vmatpush.msra.mxu1 %v81_v4  ;;  %v79_v7 = vld [vmem:[%s347_s3 + $0x68] sm:$0xff]  ;;  %v35_v8 = vld [vmem:[%s345_s1 + $0x50] sm:$0xff] }
   0x4   :  { %46 = vmatpush.msra.mxu0 %v39_v1  ;;  %v78_v9 = vld [vmem:[%s347_s3 + $0x60] sm:$0xff]  ;;  %v34_v10 = vld [vmem:[%s345_s1 + $0x48] sm:$0xff]  ;;  %v77_v11 = vld [vmem:[%s347_s3 + $0x58] sm:$0xff] }
   0x5   :  { %87 = vmatpush.msra.mxu1 %v80_v6 }
   0x6   :  { %47 = vmatpush.msra.mxu0 %v38_v2 }
   0x7   :  { %88 = vmatpush.msra.mxu1 %v79_v7 }
   0x8   :  { %48 = vmatpush.msra.mxu0 %v37_v3 }
   0xa   :  { %49 = vmatpush.msra.mxu0 %v36_v5 }
   0xc   :  { %50 = vmatpush.msra.mxu0 %v35_v8 }
   0xd   :  { %13 = vsyncpa [#allocation5], 0  ;;  %v33_v12 = vld [vmem:[%s345_s1 + $0x40] sm:$0xff]  ;;  %89 = vmatpush.msra.mxu1 %v78_v9  ;;  %v76_v13 = vld [vmem:[%s347_s3 + $0x50] sm:$0xff]  ;;  %s196_s15 = smov [#allocation4]   ;;  %s126_s19 = sshll.u32 %s350_s6, 4  ;;  %s127_s19 = int_to_ptr.hbm [resolvable:$true] %s126_s19 }
   0xe   :  { %51 = vmatpush.msra.mxu0 %v34_v10  ;;  %v32_v14 = vld [vmem:[%s345_s1 + $0x38] sm:$0xff]  ;;  %v75_v15 = vld [vmem:[%s347_s3 + $0x48] sm:$0xff]  ;;  %v31_v16 = vld [vmem:[%s345_s1 + $0x30] sm:$0xff]  ;;  %s124_s16 = sshll.u32 %s196_s15, 4  ;;  %s197_s21 = smov [#allocation2]   ;;  %s125_s16 = int_to_ptr.vmem [resolvable:$true] %s124_s16 }
   0xf   :  { %90 = vmatpush.msra.mxu1 %v77_v11  ;;  %v74_v17 = vld [vmem:[%s347_s3 + $0x40] sm:$0xff]  ;;  %v30_v18 = vld [vmem:[%s345_s1 + $0x28] sm:$0xff]  ;;  %v73_v19 = vld [vmem:[%s347_s3 + $0x38] sm:$0xff]  ;;  %s115_s24 = sshll.u32 %s349_s5, 4  ;;  %s116_s24 = int_to_ptr.hbm [resolvable:$true] %s115_s24 }
  0x10   :  { %52 = vmatpush.msra.mxu0 %v33_v12  ;;  %v29_v20 = vld [vmem:[%s345_s1 + $0x20] sm:$0xff]  ;;  %v72_v21 = vld [vmem:[%s347_s3 + $0x30] sm:$0xff]  ;;  %v28_v22 = vld [vmem:[%s345_s1 + $0x18] sm:$0xff] }
  0x11   :  { %91 = vmatpush.msra.mxu1 %v76_v13  ;;  %v71_v23 = vld [vmem:[%s347_s3 + $0x28] sm:$0xff]  ;;  %v27_v24 = vld [vmem:[%s345_s1 + $0x10] sm:$0xff]  ;;  %v70_v25 = vld [vmem:[%s347_s3 + $0x20] sm:$0xff] }
  0x12   :  { %53 = vmatpush.msra.mxu0 %v32_v14  ;;  %v26_v26 = vld [vmem:[%s345_s1 + $0x8] sm:$0xff]  ;;  %v69_v27 = vld [vmem:[%s347_s3 + $0x18] sm:$0xff]  ;;  %v25_v28 = vld [vmem:[%s345_s1] sm:$0xff] }
  0x13   :  { %92 = vmatpush.msra.mxu1 %v75_v15  ;;  %v24_v29 = vld [vmem:[%s344_s0] sm:$0xff]  ;;  %v68_v30 = vld [vmem:[%s347_s3 + $0x10] sm:$0xff]  ;;  %v67_v31 = vld [vmem:[%s347_s3 + $0x8] sm:$0xff] }
  0x14   :  { %54 = vmatpush.msra.mxu0 %v31_v16  ;;  %v66_v32 = vld [vmem:[%s347_s3] sm:$0xff] }
  0x15   :  { %93 = vmatpush.msra.mxu1 %v74_v17  ;;  %v142_v33 = vld [vmem:[%s346_s2] ss:$0 sm:$0xff]  ;;  %s113_s2 = sshll.u32 %s197_s21, 4  ;;  %s114_s2 = int_to_ptr.vmem [resolvable:$true] %s113_s2 }
  0x16   :  { %55 = vmatpush.msra.mxu0 %v30_v18  ;;  %v143_v37 = vld [vmem:[%s348_s4] ss:$0 sm:$0xff] }
  0x17   :  { %94 = vmatpush.msra.mxu1 %v73_v19 }
  0x18   :  { %56 = vmatpush.msra.mxu0 %v29_v20 }
  0x19   :  { %95 = vmatpush.msra.mxu1 %v72_v21 }
  0x1a   :  { %57 = vmatpush.msra.mxu0 %v28_v22 }
  0x1b   :  { %96 = vmatpush.msra.mxu1 %v71_v23 }
  0x1c   :  { %58 = vmatpush.msra.mxu0 %v27_v24 }
  0x1d   :  { %97 = vmatpush.msra.mxu1 %v70_v25 }
  0x1e   :  { %59 = vmatpush.msra.mxu0 %v26_v26 }
  0x1f   :  { %98 = vmatpush.msra.mxu1 %v69_v27 }
  0x20   :  { %60 = vmatpush.msra.mxu0 %v25_v28 }
  0x21   :  { %61 = vmatmul.f32.vlgmr.msra.gmra.mxu0 %v24_v29  ;;  %99 = vmatpush.msra.mxu1 %v68_v30 }
  0x23   :  { %100 = vmatpush.msra.mxu1 %v67_v31 }
  0x25   :  { %101 = vmatpush.msra.mxu1 %v66_v32 }
  0x9e   :  { %v62_v34 = vpop.f32.mrf.mxu0 }
  0x9f   :  { %v63_v35 = vadd.f32 %v142_v33, %v62_v34 }
  0xa1   :  { %106 = vst [vmem:[#allocation4] sm:$0xff] %v63_v35  ;;  %v65_v36 = vmax.f32 %v63_v35, 0.0 }
  0xa2   :  { %129 = dma.vmem_to_hbm [thread:$0]  %s125_s16, 128, %s127_s19, [#allocation5]  }
  0xa3   :  { %102 = vmatmul.f32.vlgmr.msra.gmra.mxu1 %v65_v36 }
 0x120   :  { %v103_v38 = vpop.f32.mrf.mxu1 }
 0x121   :  { %v104_v39 = vadd.f32 %v143_v37, %v103_v38 }
 0x123   :  { %107 = vst [vmem:[#allocation2] sm:$0xff] %v104_v39 }
 0x124   :  { %118 = dma.vmem_to_hbm [thread:$0]  %s114_s2, 128, %s116_s24, [#allocation3]  }
 0x125   :  { %192 = dma.done.wait [#allocation3], 128  }
 0x126   :  { %193 = vsyncadd [#allocation3], 4294967168 }
 0x127   :  { %194 = dma.done.wait [#allocation5], 128  }
 0x128   :  { %195 = vsyncadd [#allocation5], 4294967168 }
 0x129   :  { %138 = vsyncpa [#allocation3], 1 }
 0x12a   :  { %139 = vsyncpa [#allocation5], 1 }

</bundles_post_ra>
